<compile_context>
chip_gen: v6e
topology: v6e:2x2x1
jax: 0.10.0
libtpu: 0.0.40
codegen_flags: <defaults>
</compile_context>

<pallas_src>
from functools import partial

import jax
import jax.numpy as jnp
from jax.experimental import pallas as pl
from jax.experimental.pallas import tpu as pltpu


def odefunc_kernel(x_ref, x0_ref, adj_ref, m_ref, o_ref):
    # x_ref          : (Np, TFp)  compute dtype (bf16 by default)
    # x0_ref / o_ref : (Np, TFp)  float32
    # adj_ref        : (Np, Np)   compute dtype, VMEM-resident (sigmoid(alpha)/2 folded in)
    # m_ref          : (TFp, TFp) compute dtype, VMEM-resident
    x = x_ref[...]
    xa = jnp.dot(adj_ref[...], x, preferred_element_type=jnp.float32)   # spatial mix (MXU)
    xm = jnp.dot(x, m_ref[...], preferred_element_type=jnp.float32)     # feature+temporal-3x (MXU)
    o_ref[...] = (xa + xm + x0_ref[...]).astype(o_ref.dtype)


def _round_up(v, m):
    return ((v + m - 1) // m) * m


def build_odefunc_operators(adj, alpha_param, w, d, w2, d2, compute_dtype=jnp.bfloat16):
    """Parameter glue: computed once per ODE solve, reused for every f(t, x) call."""
    N = adj.shape[0]
    F_dim = w.shape[0]
    T = w2.shape[0]
    TF = T * F_dim
    dt = jnp.float32

    # Fold sigmoid(alpha)/2 into the adjacency rows.
    adj_scaled = (jax.nn.sigmoid(alpha_param.astype(dt)) * 0.5)[:, None] * adj.astype(dt)

    # Combined feature / temporal / -3x operator acting on the flattened (T*F) axis.
    w_eff = (w * jnp.clip(d, 0.0, 1.0)) @ w.T                              # (F, F)
    w2_eff = (w2 * jnp.clip(d2, 0.0, 1.0)) @ w2.T                          # (T, T)
    M = (jnp.kron(jnp.eye(T, dtype=dt), w_eff)
         + jnp.kron(w2_eff, jnp.eye(F_dim, dtype=dt))
         - 3.0 * jnp.eye(TF, dtype=dt))                                    # (TF, TF)

    # Pad to sublane/lane-friendly sizes (N -> mult of 8, T*F -> mult of 128).
    Np = _round_up(N, 8)
    TFp = _round_up(TF, 128)
    adj_p = jnp.zeros((Np, Np), dt).at[:N, :N].set(adj_scaled)
    M_p = jnp.zeros((TFp, TFp), dt).at[:TF, :TF].set(M)
    return adj_p.astype(compute_dtype), M_p.astype(compute_dtype)


def odefunc_apply(x, x0, adj_p, M_p):
    B, N, T, F_dim = x.shape
    TF = T * F_dim
    Np = adj_p.shape[0]
    TFp = M_p.shape[0]
    compute_dtype = adj_p.dtype
    out_dtype = jnp.float32

    # Contiguous reshapes (free relayout in HBM), then zero-pad to aligned sizes.
    x2 = x.reshape(B, N, TF)
    x02 = x0.reshape(B, N, TF).astype(out_dtype)
    if (Np, TFp) != (N, TF):
        pad = ((0, 0), (0, Np - N), (0, TFp - TF))
        x2 = jnp.pad(x2, pad)
        x02 = jnp.pad(x02, pad)
    x2 = x2.astype(compute_dtype)   # bf16 MXU operand -> also halves x HBM traffic

    # VMEM budget: resident operators + double-buffered x / x0 / out blocks.
    itemsize = jnp.dtype(compute_dtype).itemsize
    resident = (Np * Np + TFp * TFp) * itemsize
    per_step = Np * TFp * (itemsize + 4 + 4)          # x (compute) + x0 (f32) + out (f32)
    est = 2 * resident + 2 * per_step
    cparams = dict(dimension_semantics=("parallel",))  # v7x: shard batch over both TCs
    if est > 12 * 1024 * 1024:
        # Raise the scoped-VMEM limit only when the default (16 MiB on v5e,
        # 32 MiB on v6e/v7x) would be too small; stay under v7x's 64 MiB physical.
        cparams["vmem_limit_bytes"] = int(min(est * 1.5, 60 * 1024 * 1024))

    x_spec = pl.BlockSpec((pl.Squeezed(), Np, TFp), lambda b: (b, 0, 0))
    x0_spec = pl.BlockSpec((pl.Squeezed(), Np, TFp), lambda b: (b, 0, 0))
    adj_spec = pl.BlockSpec((Np, Np), lambda b: (0, 0),
                            memory_space=pltpu.MemorySpace.VMEM)   # resident across grid
    m_spec = pl.BlockSpec((TFp, TFp), lambda b: (0, 0),
                          memory_space=pltpu.MemorySpace.VMEM)     # resident across grid
    out_spec = pl.BlockSpec((pl.Squeezed(), Np, TFp), lambda b: (b, 0, 0))

    out = pl.pallas_call(
        odefunc_kernel,
        grid=(B,),
        in_specs=[x_spec, x0_spec, adj_spec, m_spec],
        out_specs=out_spec,
        out_shape=jax.ShapeDtypeStruct((B, Np, TFp), out_dtype),
        compiler_params=pltpu.CompilerParams(**cparams),
    )(x2, x02, adj_p, M_p)

    return out[:, :N, :TF].reshape(B, N, T, F_dim).astype(x.dtype)


def odefunc_forward(x, x0, adj, alpha_param, w, d, w2, d2, compute_dtype=jnp.bfloat16):
    adj_p, M_p = build_odefunc_operators(adj, alpha_param, w, d, w2, d2, compute_dtype)
    return odefunc_apply(x, x0, adj_p, M_p)


def odefunc_reference(x, x0, adj, alpha_param, w, d, w2, d2):
    """Pure-JAX reference mirroring the PyTorch forward exactly."""
    alpha = jax.nn.sigmoid(alpha_param)[None, :, None, None]
    xa = jnp.einsum('ij,kjlm->kilm', adj, x)
    d_c = jnp.clip(d, 0.0, 1.0)
    w_eff = (w * d_c) @ w.T
    xw = jnp.einsum('ijkl,lm->ijkm', x, w_eff)
    d2_c = jnp.clip(d2, 0.0, 1.0)
    w2_eff = (w2 * d2_c) @ w2.T
    xw2 = jnp.einsum('ijkl,km->ijml', x, w2_eff)
    return alpha / 2.0 * xa - x + xw - x + xw2 - x + x0


if __name__ == "__main__":
    # Small shapes consistent with the module:
    B, N, T, F = 2, 16, 8, 4   # batch, num_nodes, temporal_dim, feature_dim

    key = jax.random.PRNGKey(0)
    k_x, k_x0, k_adj, k_w, k_w2 = jax.random.split(key, 5)

    x = jax.random.normal(k_x, (B, N, T, F), dtype=jnp.float32)
    x0 = jax.random.normal(k_x0, (B, N, T, F), dtype=jnp.float32)
    adj = jax.random.uniform(k_adj, (N, N), dtype=jnp.float32)

    # Parameters per __init__ (shapes identical), with a tiny deterministic
    # perturbation on w / w2 so the feature / temporal matmuls are non-trivial.
    alpha_param = 0.8 * jnp.ones((N,), dtype=jnp.float32)
    w = jnp.eye(F, dtype=jnp.float32) + 0.05 * jax.random.normal(k_w, (F, F), jnp.float32)
    d = jnp.ones((F,), dtype=jnp.float32)
    w2 = jnp.eye(T, dtype=jnp.float32) + 0.05 * jax.random.normal(k_w2, (T, T), jnp.float32)
    d2 = jnp.ones((T,), dtype=jnp.float32)
    # (beta = 0.6 exists in __init__ but is unused in forward.)

    ref = odefunc_reference(x, x0, adj, alpha_param, w, d, w2, d2)

    # f32 validation path (tight tolerance).
    fwd_f32 = jax.jit(partial(odefunc_forward, compute_dtype=jnp.float32))
    out_f32 = jax.block_until_ready(fwd_f32(x, x0, adj, alpha_param, w, d, w2, d2))
    assert out_f32.shape == (B, N, T, F)
    assert jnp.allclose(out_f32, ref, rtol=1e-5, atol=2e-4), "f32 Pallas output mismatch vs reference"

    # bf16-MXU production path (f32 accumulation; loose tolerance for bf16 operands).
    fwd_bf16 = jax.jit(partial(odefunc_forward, compute_dtype=jnp.bfloat16))
    out_bf16 = jax.block_until_ready(fwd_bf16(x, x0, adj, alpha_param, w, d, w2, d2))
    assert out_bf16.shape == (B, N, T, F)
    assert jnp.allclose(out_bf16, ref, rtol=5e-2, atol=1e-1), "bf16 Pallas output mismatch vs reference"

    print("KERNEL_OK")
</pallas_src>

<mosaic_0001>
module attributes {stable_mosaic.version = 11 : i64} {
  func.func @odefunc_kernel(%arg0: i32, %arg1: memref<1x16x128xf32, #tpu.memory_space<vmem>>, %arg2: memref<1x16x128xf32, #tpu.memory_space<vmem>>, %arg3: memref<16x16xf32, #tpu.memory_space<vmem>>, %arg4: memref<128x128xf32, #tpu.memory_space<vmem>>, %arg5: memref<1x16x128xf32, #tpu.memory_space<vmem>>) attributes {dimension_semantics = [#tpu.dimension_semantics<parallel>], iteration_bounds = array<i64: 2>, scalar_prefetch = 0 : i64, scratch_operands = 0 : i64, tpu.core_type = #tpu.core_type<tc>, window_params = [{transform_indices = @transform_0, window_bounds = array<i64: 1, 16, 128>}, {transform_indices = @transform_1, window_bounds = array<i64: 1, 16, 128>}, {pipeline_mode = #tpu.pipeline_mode<synchronous>, transform_indices = @transform_2, window_bounds = array<i64: 16, 16>}, {pipeline_mode = #tpu.pipeline_mode<synchronous>, transform_indices = @transform_3, window_bounds = array<i64: 128, 128>}, {transform_indices = @transform_4, window_bounds = array<i64: 1, 16, 128>}]} {
    %c0 = arith.constant 0 : index
    %c0_0 = arith.constant 0 : index
    %c0_1 = arith.constant 0 : index
    %0 = vector.load %arg1[%c0, %c0_0, %c0_1] : memref<1x16x128xf32, #tpu.memory_space<vmem>>, vector<1x16x128xf32>
    %1 = vector.shape_cast %0 : vector<1x16x128xf32> to vector<16x128xf32>
    %c0_2 = arith.constant 0 : index
    %c0_3 = arith.constant 0 : index
    %2 = vector.load %arg3[%c0_2, %c0_3] : memref<16x16xf32, #tpu.memory_space<vmem>>, vector<16x16xf32>
    %cst = arith.constant dense<0.000000e+00> : vector<16x128xf32>
    %3 = tpu.matmul %2, %1, %cst {dimension_numbers = #tpu.dot_dimension_numbers<[1], [0], [0], [1], [0, 0, 1, 1], [], []>} : vector<16x16xf32>, vector<16x128xf32>, vector<16x128xf32> -> vector<16x128xf32>
    %c0_4 = arith.constant 0 : index
    %c0_5 = arith.constant 0 : index
    %4 = vector.load %arg4[%c0_4, %c0_5] : memref<128x128xf32, #tpu.memory_space<vmem>>, vector<128x128xf32>
    %cst_6 = arith.constant dense<0.000000e+00> : vector<16x128xf32>
    %5 = tpu.matmul %1, %4, %cst_6 {dimension_numbers = #tpu.dot_dimension_numbers<[1], [0], [0], [1], [0, 0, 1, 1], [], []>} : vector<16x128xf32>, vector<128x128xf32>, vector<16x128xf32> -> vector<16x128xf32>
    %6 = arith.addf %3, %5 : vector<16x128xf32>
    %c0_7 = arith.constant 0 : index
    %c0_8 = arith.constant 0 : index
    %c0_9 = arith.constant 0 : index
    %7 = vector.load %arg2[%c0_7, %c0_8, %c0_9] : memref<1x16x128xf32, #tpu.memory_space<vmem>>, vector<1x16x128xf32>
    %8 = vector.shape_cast %7 : vector<1x16x128xf32> to vector<16x128xf32>
    %9 = arith.addf %6, %8 : vector<16x128xf32>
    %c0_10 = arith.constant 0 : index
    %c0_11 = arith.constant 0 : index
    %c0_12 = arith.constant 0 : index
    %10 = vector.load %arg5[%c0_10, %c0_11, %c0_12] : memref<1x16x128xf32, #tpu.memory_space<vmem>>, vector<1x16x128xf32>
    %11 = vector.shape_cast %10 : vector<1x16x128xf32> to vector<16x128xf32>
    %12 = vector.shape_cast %9 : vector<16x128xf32> to vector<1x16x128xf32>
    tpu.vector_store %arg5[%c0_10, %c0_11, %c0_12], %12 {strides = array<i32>} : memref<1x16x128xf32, #tpu.memory_space<vmem>>, vector<1x16x128xf32>,
    return
  }
  func.func @transform_0(%arg0: i32) -> (i32, i32, i32) {
    %c0_i32 = arith.constant 0 : i32
    %c0_i32_0 = arith.constant 0 : i32
    %c0_i32_1 = arith.constant 0 : i32
    return %arg0, %c0_i32, %c0_i32_0 : i32, i32, i32
  }
  func.func @transform_1(%arg0: i32) -> (i32, i32, i32) {
    %c0_i32 = arith.constant 0 : i32
    %c0_i32_0 = arith.constant 0 : i32
    %c0_i32_1 = arith.constant 0 : i32
    return %arg0, %c0_i32, %c0_i32_0 : i32, i32, i32
  }
  func.func @transform_2(%arg0: i32) -> (i32, i32) {
    %c0_i32 = arith.constant 0 : i32
    %c0_i32_0 = arith.constant 0 : i32
    %c0_i32_1 = arith.constant 0 : i32
    return %c0_i32, %c0_i32_0 : i32, i32
  }
  func.func @transform_3(%arg0: i32) -> (i32, i32) {
    %c0_i32 = arith.constant 0 : i32
    %c0_i32_0 = arith.constant 0 : i32
    %c0_i32_1 = arith.constant 0 : i32
    return %c0_i32, %c0_i32_0 : i32, i32
  }
  func.func @transform_4(%arg0: i32) -> (i32, i32, i32) {
    %c0_i32 = arith.constant 0 : i32
    %c0_i32_0 = arith.constant 0 : i32
    %c0_i32_1 = arith.constant 0 : i32
    return %arg0, %c0_i32, %c0_i32_0 : i32, i32, i32
  }
}

</mosaic_0001>

<bundles_post_ra>
// kernel: odefunc_forward.1
= control target key start
LH: loop header
LB: loop body
LE: loop exit
PB: predicated region body
PF: predicated region fallthrough
CT: control target
= control target key end

     0   :  { %s591_s15 = smov 0   ;;  %s672_s0 = inlined_call_operand.vmem [shape: f32[2,16,128], index: 0, kind: input, shape index: {}]   ;;  %s673_s1 = inlined_call_operand.vmem [shape: f32[2,16,128], index: 1, kind: input, shape index: {}]   ;;  %s674_s2 = inlined_call_operand.vmem [shape: f32[16,16], index: 2, kind: input, shape index: {}]   ;;  %s675_s3 = inlined_call_operand.vmem [shape: f32[128,128], index: 3, kind: input, shape index: {}]   ;;  %s676_s4 = inlined_call_operand.vmem [shape: f32[2,16,128], index: 4, kind: output, shape index: {}]  }
   0x1 LB: > { %s468_s16 = sadd.s32 4294967295, %s564_s15   ;;  %p472_p0 = scmp.ge.s32.totalorder %s564_s15, 1  ;;  %s564_s15 = sphi %s591_s15, %s14_s15  }
   0x2   : > { %p172_p1 = scmp.lt.s32.totalorder %s564_s15, 3 }
   0x4   : > { %p173_p2 = pnand %p472_p0, %p172_p1 }
   0x5   : > { %p203_p3 = scmp.lt.s32.totalorder (!%p173_p2), %s468_s16, 1 }
   0x6   : > { %176 = sbr.rel (%p173_p2) target bundleno = 244 (0xf4), region = 36 }
   0xb   : > { %v237_v0 = vld [vmem:[%s675_s3 + $0x78] sm:$0xff]  ;;  %v236_v1 = vld [vmem:[%s675_s3 + $0x70] sm:$0xff]  ;;  %v235_v2 = vld [vmem:[%s675_s3 + $0x68] sm:$0xff]  ;;  %s678_s16 = smov (!%p203_p3, %s468_s16), 1  ;;  %vm313_vm0 = vcmask 130048  }
   0xc   : > { %508 = vmatprep.subr.mxu0 %v237_v0  ;;  %v234_v3 = vld [vmem:[%s675_s3 + $0x60] sm:$0xff]  ;;  %s611_s25 = sshll.u32 %s678_s16, 4  ;;  %v233_v5 = vld [vmem:[%s675_s3 + $0x58] sm:$0xff]  ;;  %v232_v8 = vld [vmem:[%s675_s3 + $0x50] sm:$0xff] }
   0xd   : > { %509 = vmatpush3.msra.mxu0 %v237_v0  ;;  %s207_s28 = scalar_lea.vmem %s672_s0, %s611_s25  ;;  %v220_v4 = vld [vmem:[%s674_s2] sm:$0xff]  ;;  %v221_v9 = vld [vmem:[%s674_s2 + $0x8] sm:$0xff]  ;;  %v229_v12 = vld [vmem:[%s675_s3 + $0x38] sm:$0xff]  ;;  %s212_s9 = scalar_lea.vmem %s673_s1, %s611_s25 }
   0xe   : > { %510 = vmatprep.subr.mxu0 %v236_v1  ;;  %v219_v6 = vld [vmem:[%s207_s28 + $0x8] sm:$0xff]  ;;  %v218_v7 = vld [vmem:[%s207_s28] sm:$0xff]  ;;  %547 = vmatprep.mubr.msk.f32.mxu1 %vm313_vm0, %v220_v4  ;;  %v228_v13 = vld [vmem:[%s675_s3 + $0x30] sm:$0xff]  ;;  %s217_s12 = scalar_lea.vmem %s676_s4, %s611_s25 }
   0xf   : > { %511 = vmatpush3.msra.mxu0 %v236_v1  ;;  %543 = vmatprep.subr.mxu1 %v219_v6  ;;  %v231_v10 = vld [vmem:[%s675_s3 + $0x48] sm:$0xff]  ;;  %v230_v11 = vld [vmem:[%s675_s3 + $0x40] sm:$0xff]  ;;  %v225_v16 = vld [vmem:[%s675_s3 + $0x18] sm:$0xff] }
  0x10   : > { %512 = vmatprep.subr.mxu0 %v235_v2  ;;  %544 = vmatpush3.msra.mxu1 %v219_v6  ;;  %v227_v14 = vld [vmem:[%s675_s3 + $0x28] sm:$0xff]  ;;  %v226_v15 = vld [vmem:[%s675_s3 + $0x20] sm:$0xff]  ;;  %v224_v17 = vld [vmem:[%s675_s3 + $0x10] sm:$0xff] }
  0x11   : > { %513 = vmatpush3.msra.mxu0 %v235_v2  ;;  %545 = vmatprep.subr.mxu1 %v218_v7  ;;  %v223_v18 = vld [vmem:[%s675_s3 + $0x8] sm:$0xff]  ;;  %v222_v19 = vld [vmem:[%s675_s3] sm:$0xff] }
  0x12   : > { %514 = vmatprep.subr.mxu0 %v234_v3  ;;  %546 = vmatpush3.msra.mxu1 %v218_v7  ;;  %v396_v22 = vld [vmem:[%s212_s9 + $0x8] sm:$0xff]  ;;  %v395_v26 = vld [vmem:[%s212_s9] sm:$0xff] }
  0x13   : > { %515 = vmatpush3.msra.mxu0 %v234_v3  ;;  %548 = vmatmul.mubr.msk.f32.vlgmr.msra.gmra.mxu1 %vm313_vm0, %v221_v9 }
  0x14   : > { %516 = vmatprep.subr.mxu0 %v233_v5  ;;  %540 = vmatprep.mubr.f32.mxu0 %v218_v7 }
  0x15   : > { %517 = vmatpush3.msra.mxu0 %v233_v5 }
  0x16   : > { %518 = vmatprep.subr.mxu0 %v232_v8 }
  0x17   : > { %519 = vmatpush3.msra.mxu0 %v232_v8 }
  0x18   : > { %520 = vmatprep.subr.mxu0 %v231_v10 }
  0x19   : > { %521 = vmatpush3.msra.mxu0 %v231_v10 }
  0x1a   : > { %522 = vmatprep.subr.mxu0 %v230_v11 }
  0x1b   : > { %523 = vmatpush3.msra.mxu0 %v230_v11 }
  0x1c   : > { %524 = vmatprep.subr.mxu0 %v229_v12 }
  0x1d   : > { %525 = vmatpush3.msra.mxu0 %v229_v12 }
  0x1e   : > { %526 = vmatprep.subr.mxu0 %v228_v13 }
  0x1f   : > { %527 = vmatpush3.msra.mxu0 %v228_v13 }
  0x20   : > { %528 = vmatprep.subr.mxu0 %v227_v14 }
  0x21   : > { %529 = vmatpush3.msra.mxu0 %v227_v14 }
  0x22   : > { %530 = vmatprep.subr.mxu0 %v226_v15 }
  0x23   : > { %531 = vmatpush3.msra.mxu0 %v226_v15 }
  0x24   : > { %532 = vmatprep.subr.mxu0 %v225_v16 }
  0x25   : > { %533 = vmatpush3.msra.mxu0 %v225_v16 }
  0x26   : > { %534 = vmatprep.subr.mxu0 %v224_v17 }
  0x27   : > { %535 = vmatpush3.msra.mxu0 %v224_v17 }
  0x28   : > { %536 = vmatprep.subr.mxu0 %v223_v18 }
  0x29   : > { %537 = vmatpush3.msra.mxu0 %v223_v18 }
  0x2a   : > { %538 = vmatprep.subr.mxu0 %v222_v19 }
  0x2b   : > { %539 = vmatpush3.msra.mxu0 %v222_v19 }
  0x2c   : > { %541 = vmatmul.mubr.f32.vlgmr.msra.gmra.mxu0 %v219_v6 }
  0xd3   : > { %v549_v20 = vpop.f32.mrf.mxu1 }
  0xd5   : > { %v386_v24 = vpop.f32.mrf.mxu1 }
  0xec   : > { %v542_v21 = vpop.f32.mrf.mxu0 }
  0xed   : > { %v392_v23 = vadd.f32 %v549_v20, %v542_v21 }
  0xee   : > { %v304_v25 = vpop.f32.mrf.mxu0 }
  0xef   : > { %v398_v27 = vadd.f32 %v396_v22, %v392_v23  ;;  %v387_v28 = vadd.f32 %v386_v24, %v304_v25 }
  0xf1   : > { %400 = vst [vmem:[%s217_s12 + $0x8] sm:$0xff] %v398_v27  ;;  %v397_v29 = vadd.f32 %v395_v26, %v387_v28 }
  0xf3   : > { %399 = vst [vmem:[%s217_s12] sm:$0xff] %v397_v29 }
  0xf4 PF: > { %s14_s15 = sadd.s32 1, %s564_s15  }
  0xf5   : > { %p11_p4 = scmp.ge.s32.totalorder %s14_s15, 4  }
  0xf7   :  { %13 = sbr.rel (!%p11_p4) target bundleno = 1 (0x1), region = 69 }

</bundles_post_ra>
